<compile_context>
chip_gen: v7x
topology: tpu7x:2x2x1
jax: 0.10.0
libtpu: 0.0.40
codegen_flags: <defaults>
</compile_context>

<pallas_src>
import jax
import jax.numpy as jnp
from jax import lax
from jax.experimental import pallas as pl
from jax.experimental.pallas import tpu as pltpu


# --------------------------------------------------------------------------- #
# Kernel body (shared by both variants)
# --------------------------------------------------------------------------- #
def _forward_tile(w1_ref, b1_ref, w2_ref, b2_ref, wout_ref, bout_ref, x_ref):
    """Run all residual blocks + final projection for one batch tile.

    Internal layout: feat is (D, TB) with the batch tile on the lane axis.
    Returns (feat, pred) with shapes (D, TB) and (O, TB), both f32.
    """
    num_layers = w1_ref.shape[0]
    out_dim = wout_ref.shape[1]

    # Put the batch on the lane axis once: (TB, D) -> (D, TB).
    feat = x_ref[...].astype(jnp.float32).T

    def layer(l, feat):
        # ResidualBlock: feat + ReLU(W2 @ ReLU(W1 @ feat + b1) + b2)
        h = jnp.dot(w1_ref[l], feat.astype(jnp.bfloat16),
                    preferred_element_type=jnp.float32)          # (H, TB)
        h = jnp.maximum(h + b1_ref[l], 0.0)                      # +(H,1) lane bcast
        y = jnp.dot(w2_ref[l], h.astype(jnp.bfloat16),
                    preferred_element_type=jnp.float32)          # (D, TB)
        y = jnp.maximum(y + b2_ref[l], 0.0)
        return feat + y

    # L is small & static -> fully unroll for cross-layer scheduling.
    feat = lax.fori_loop(0, num_layers, layer, feat, unroll=True)

    # Final linear layer: O is tiny (typically 1), so keep it off the MXU.
    # Per output column: VPU broadcast-multiply + sublane reduce -> (1, TB).
    cols = [jnp.sum(wout_ref[:, o:o + 1] * feat, axis=0, keepdims=True)
            for o in range(out_dim)]
    pred = cols[0] if out_dim == 1 else jnp.concatenate(cols, axis=0)
    pred = pred + bout_ref[...]                                   # +(O,1) lane bcast
    return feat, pred


def _resnet_kernel_pred(w1_ref, b1_ref, w2_ref, b2_ref, wout_ref, bout_ref,
                        x_ref, pred_ref):
    _, pred = _forward_tile(w1_ref, b1_ref, w2_ref, b2_ref,
                            wout_ref, bout_ref, x_ref)
    pred_ref[...] = pred.astype(pred_ref.dtype)


def _resnet_kernel_feat(w1_ref, b1_ref, w2_ref, b2_ref, wout_ref, bout_ref,
                        x_ref, feat_ref, pred_ref):
    feat, pred = _forward_tile(w1_ref, b1_ref, w2_ref, b2_ref,
                               wout_ref, bout_ref, x_ref)
    feat_ref[...] = feat.astype(feat_ref.dtype)
    pred_ref[...] = pred.astype(pred_ref.dtype)


# --------------------------------------------------------------------------- #
# VMEM budget estimate (explicit scoped-VMEM limit; v5e default is only 16 MiB)
# --------------------------------------------------------------------------- #
def _ceil_to(n, m):
    return ((n + m - 1) // m) * m


def _padded_tile_bytes(shape, dtype):
    itemsize = jnp.dtype(dtype).itemsize
    if len(shape) == 1:
        lead, s, l = 1, 1, shape[0]
    else:
        lead = 1
        for d in shape[:-2]:
            lead *= d
        s, l = shape[-2], shape[-1]
    sublane = {4: 8, 2: 16, 1: 32}.get(itemsize, 8)
    return lead * _ceil_to(s, sublane) * _ceil_to(l, 128) * itemsize


def _vmem_limit_bytes(L, D, H, O, TB, with_features):
    n = 0
    n += _padded_tile_bytes((L, H, D), jnp.bfloat16)   # W1 stack
    n += _padded_tile_bytes((L, D, H), jnp.bfloat16)   # W2 stack
    n += _padded_tile_bytes((L, H, 1), jnp.float32)    # b1 stack
    n += _padded_tile_bytes((L, D, 1), jnp.float32)    # b2 stack
    n += _padded_tile_bytes((D, O), jnp.float32)       # Wout
    n += _padded_tile_bytes((O, 1), jnp.float32)       # bout
    n += _padded_tile_bytes((TB, D), jnp.float32)      # x tile
    n += _padded_tile_bytes((O, TB), jnp.float32)      # pred tile
    if with_features:
        n += _padded_tile_bytes((D, TB), jnp.float32)  # features tile
    # x6: double-buffering of every operand + intermediates + internal scratch.
    return int(min(max(6 * n, 16 * 2**20), 48 * 2**20))


# --------------------------------------------------------------------------- #
# Wrapper
# --------------------------------------------------------------------------- #
def resnet_forward(x, params, return_features=False, block_batch=512):
    """x: (B, data_dim) float32 (or (B, ...) -> flattened like is_img=True)."""
    if x.ndim > 2:                       # mirrors is_img=True: x.view(B, -1)
        x = x.reshape(x.shape[0], -1)

    w1, b1, w2, b2, wout, bout = (params["w1"], params["b1"], params["w2"],
                                  params["b2"], params["wout"], params["bout"])
    L, H, D = w1.shape
    B = x.shape[0]
    O = wout.shape[1]

    # Batch tiling. The batch lands on the lane axis in-kernel, so multi-tile
    # runs use 128-multiple tiles; small batches use one full tile (no padded
    # copy of x). Partial edge tiles are masked by Pallas.
    block_batch = max(128, (block_batch // 128) * 128)
    if B <= block_batch:
        TB, num_tiles = B, 1
    else:
        TB, num_tiles = block_batch, pl.cdiv(B, block_batch)

    weight_specs = [
        pl.BlockSpec((L, H, D), lambda b: (0, 0, 0)),   # W1 stack (bf16)
        pl.BlockSpec((L, H, 1), lambda b: (0, 0, 0)),   # b1 stack
        pl.BlockSpec((L, D, H), lambda b: (0, 0, 0)),   # W2 stack (bf16)
        pl.BlockSpec((L, D, 1), lambda b: (0, 0, 0)),   # b2 stack
        pl.BlockSpec((D, O), lambda b: (0, 0)),         # Wout
        pl.BlockSpec((O, 1), lambda b: (0, 0)),         # bout
    ]
    x_spec = pl.BlockSpec((TB, D), lambda b: (b, 0))
    pred_spec = pl.BlockSpec((O, TB), lambda b: (0, b))     # lane-dense store
    feat_spec = pl.BlockSpec((D, TB), lambda b: (0, b))     # lane-dense store

    compiler_params = pltpu.CompilerParams(
        dimension_semantics=("parallel",),   # batch tiles shard across TCs (v7x)
        vmem_limit_bytes=_vmem_limit_bytes(L, D, H, O, TB, return_features),
    )

    if return_features:
        feat_t, pred_t = pl.pallas_call(
            _resnet_kernel_feat,
            out_shape=(jax.ShapeDtypeStruct((D, B), jnp.float32),
                       jax.ShapeDtypeStruct((O, B), jnp.float32)),
            grid_spec=pltpu.PrefetchScalarGridSpec(
                num_scalar_prefetch=0,
                grid=(num_tiles,),
                in_specs=weight_specs + [x_spec],
                out_specs=[feat_spec, pred_spec],
            ),
            compiler_params=compiler_params,
        )(w1, b1, w2, b2, wout, bout, x)
        return feat_t.T, pred_t.T

    pred_t = pl.pallas_call(
        _resnet_kernel_pred,
        out_shape=jax.ShapeDtypeStruct((O, B), jnp.float32),
        grid_spec=pltpu.PrefetchScalarGridSpec(
            num_scalar_prefetch=0,
            grid=(num_tiles,),
            in_specs=weight_specs + [x_spec],
            out_specs=pred_spec,
        ),
        compiler_params=compiler_params,
    )(w1, b1, w2, b2, wout, bout, x)
    return pred_t.T


# --------------------------------------------------------------------------- #
# Params + pure-JAX reference
# --------------------------------------------------------------------------- #
def init_params(key, data_dim, hidden_dim, num_layers, output_dim):
    """Mimics nn.Linear uniform fan-in init; hidden weights stored (out,in) bf16."""
    ks = jax.random.split(key, 6)

    def unif(k, shape, fan_in, dtype=jnp.float32):
        bound = 1.0 / jnp.sqrt(fan_in)
        return jax.random.uniform(k, shape, jnp.float32, -bound, bound).astype(dtype)

    return {
        "w1": unif(ks[0], (num_layers, hidden_dim, data_dim), data_dim, jnp.bfloat16),
        "b1": unif(ks[1], (num_layers, hidden_dim, 1), data_dim),
        "w2": unif(ks[2], (num_layers, data_dim, hidden_dim), hidden_dim, jnp.bfloat16),
        "b2": unif(ks[3], (num_layers, data_dim, 1), hidden_dim),
        "wout": unif(ks[4], (data_dim, output_dim), data_dim),
        "bout": unif(ks[5], (output_dim, 1), data_dim),
    }


def resnet_reference(x, params):
    """Pure-JAX (f32) reference of the PyTorch forward pass."""
    feat = x
    L = params["w1"].shape[0]
    for l in range(L):
        w1 = params["w1"][l].astype(jnp.float32)   # (H, D)
        w2 = params["w2"][l].astype(jnp.float32)   # (D, H)
        h = jnp.maximum(feat @ w1.T + params["b1"][l, :, 0], 0.0)
        y = jnp.maximum(h @ w2.T + params["b2"][l, :, 0], 0.0)
        feat = feat + y
    pred = feat @ params["wout"] + params["bout"][:, 0]
    return feat, pred


# TODO(synk): ResNet.trajectory() is a host-side Python loop over prefixes of
# the block stack with .item() calls; it is not part of forward() and is left
# to the caller (it can be built by calling resnet_forward on param prefixes).

if __name__ == "__main__":
    # Small shapes consistent with the module: non-image points (B, data_dim).
    batch, data_dim, hidden_dim, num_layers, output_dim = 8, 16, 32, 3, 1

    key = jax.random.PRNGKey(0)
    kx, kp = jax.random.split(key)
    x = jax.random.normal(kx, (batch, data_dim), jnp.float32)
    params = init_params(kp, data_dim, hidden_dim, num_layers, output_dim)

    # Common path: prediction only (no features writeback).
    pred = resnet_forward(x, params)
    pred = jax.block_until_ready(pred)

    # Features path.
    feats, pred2 = resnet_forward(x, params, return_features=True)
    jax.block_until_ready((feats, pred2))

    ref_feat, ref_pred = resnet_reference(x, params)
    assert pred.shape == (batch, output_dim)
    assert feats.shape == (batch, data_dim)
    # bf16 MXU operands with f32 accumulation -> relaxed tolerance.
    assert jnp.allclose(pred, ref_pred, atol=5e-2, rtol=5e-2), "pred mismatch"
    assert jnp.allclose(pred2, ref_pred, atol=5e-2, rtol=5e-2), "pred2 mismatch"
    assert jnp.allclose(feats, ref_feat, atol=5e-2, rtol=5e-2), "feat mismatch"

    print("KERNEL_OK")
</pallas_src>

<mosaic_0001>
module attributes {stable_mosaic.version = 11 : i64} {
  func.func @_resnet_kernel_pred(%arg0: i32, %arg1: memref<3x32x16xbf16, #tpu.memory_space<vmem>>, %arg2: memref<3x32x1xf32, #tpu.memory_space<vmem>>, %arg3: memref<3x16x32xbf16, #tpu.memory_space<vmem>>, %arg4: memref<3x16x1xf32, #tpu.memory_space<vmem>>, %arg5: memref<16x1xf32, #tpu.memory_space<vmem>>, %arg6: memref<1x1xf32, #tpu.memory_space<vmem>>, %arg7: memref<8x16xf32, #tpu.memory_space<vmem>>, %arg8: memref<1x8xf32, #tpu.memory_space<vmem>>) attributes {dimension_semantics = [#tpu.dimension_semantics<parallel>], iteration_bounds = array<i64: 1>, scalar_prefetch = 0 : i64, scratch_operands = 0 : i64, tpu.core_type = #tpu.core_type<tc>, window_params = [{pipeline_mode = #tpu.pipeline_mode<synchronous>, transform_indices = @transform_0, window_bounds = array<i64: 3, 32, 16>}, {pipeline_mode = #tpu.pipeline_mode<synchronous>, transform_indices = @transform_1, window_bounds = array<i64: 3, 32, 1>}, {pipeline_mode = #tpu.pipeline_mode<synchronous>, transform_indices = @transform_2, window_bounds = array<i64: 3, 16, 32>}, {pipeline_mode = #tpu.pipeline_mode<synchronous>, transform_indices = @transform_3, window_bounds = array<i64: 3, 16, 1>}, {pipeline_mode = #tpu.pipeline_mode<synchronous>, transform_indices = @transform_4, window_bounds = array<i64: 16, 1>}, {pipeline_mode = #tpu.pipeline_mode<synchronous>, transform_indices = @transform_5, window_bounds = array<i64: 1, 1>}, {transform_indices = @transform_6, window_bounds = array<i64: 8, 16>}, {transform_indices = @transform_7, window_bounds = array<i64: 1, 8>}]} {
    %c0 = arith.constant 0 : index
    %c0_0 = arith.constant 0 : index
    %0 = vector.load %arg7[%c0, %c0_0] : memref<8x16xf32, #tpu.memory_space<vmem>>, vector<8x16xf32>
    %1 = tpu.transpose %0, [1, 0] : vector<8x16xf32> -> vector<16x8xf32>
    %c0_i32 = arith.constant 0 : i32
    %2 = arith.index_cast %c0_i32 : i32 to index
    %c0_1 = arith.constant 0 : index
    %c0_2 = arith.constant 0 : index
    %3 = vector.load %arg1[%2, %c0_1, %c0_2] : memref<3x32x16xbf16, #tpu.memory_space<vmem>>, vector<1x32x16xbf16>
    %4 = vector.shape_cast %3 : vector<1x32x16xbf16> to vector<32x16xbf16>
    %5 = arith.truncf %1 : vector<16x8xf32> to vector<16x8xbf16>
    %cst = arith.constant dense<0.000000e+00> : vector<32x8xf32>
    %6 = tpu.matmul %4, %5, %cst {dimension_numbers = #tpu.dot_dimension_numbers<[1], [0], [0], [1], [0, 0, 1, 1], [], []>} : vector<32x16xbf16>, vector<16x8xbf16>, vector<32x8xf32> -> vector<32x8xf32>
    %7 = arith.index_cast %c0_i32 : i32 to index
    %c0_3 = arith.constant 0 : index
    %c0_4 = arith.constant 0 : index
    %8 = vector.load %arg2[%7, %c0_3, %c0_4] : memref<3x32x1xf32, #tpu.memory_space<vmem>>, vector<1x32x1xf32>
    %9 = vector.shape_cast %8 : vector<1x32x1xf32> to vector<32x1xf32>
    %10 = vector.broadcast %9 : vector<32x1xf32> to vector<32x8xf32>
    %11 = arith.addf %6, %10 : vector<32x8xf32>
    %cst_5 = arith.constant 0.000000e+00 : f32
    %12 = vector.broadcast %cst_5 : f32 to vector<32x8xf32>
    %13 = arith.maximumf %11, %12 : vector<32x8xf32>
    %14 = arith.index_cast %c0_i32 : i32 to index
    %c0_6 = arith.constant 0 : index
    %c0_7 = arith.constant 0 : index
    %15 = vector.load %arg3[%14, %c0_6, %c0_7] : memref<3x16x32xbf16, #tpu.memory_space<vmem>>, vector<1x16x32xbf16>
    %16 = vector.shape_cast %15 : vector<1x16x32xbf16> to vector<16x32xbf16>
    %17 = arith.truncf %13 : vector<32x8xf32> to vector<32x8xbf16>
    %cst_8 = arith.constant dense<0.000000e+00> : vector<16x8xf32>
    %18 = tpu.matmul %16, %17, %cst_8 {dimension_numbers = #tpu.dot_dimension_numbers<[1], [0], [0], [1], [0, 0, 1, 1], [], []>} : vector<16x32xbf16>, vector<32x8xbf16>, vector<16x8xf32> -> vector<16x8xf32>
    %19 = arith.index_cast %c0_i32 : i32 to index
    %c0_9 = arith.constant 0 : index
    %c0_10 = arith.constant 0 : index
    %20 = vector.load %arg4[%19, %c0_9, %c0_10] : memref<3x16x1xf32, #tpu.memory_space<vmem>>, vector<1x16x1xf32>
    %21 = vector.shape_cast %20 : vector<1x16x1xf32> to vector<16x1xf32>
    %22 = vector.broadcast %21 : vector<16x1xf32> to vector<16x8xf32>
    %23 = arith.addf %18, %22 : vector<16x8xf32>
    %cst_11 = arith.constant 0.000000e+00 : f32
    %24 = vector.broadcast %cst_11 : f32 to vector<16x8xf32>
    %25 = arith.maximumf %23, %24 : vector<16x8xf32>
    %26 = arith.addf %1, %25 : vector<16x8xf32>
    %c1_i32 = arith.constant 1 : i32
    %27 = arith.index_cast %c1_i32 : i32 to index
    %c0_12 = arith.constant 0 : index
    %c0_13 = arith.constant 0 : index
    %28 = vector.load %arg1[%27, %c0_12, %c0_13] : memref<3x32x16xbf16, #tpu.memory_space<vmem>>, vector<1x32x16xbf16>
    %29 = vector.shape_cast %28 : vector<1x32x16xbf16> to vector<32x16xbf16>
    %30 = arith.truncf %26 : vector<16x8xf32> to vector<16x8xbf16>
    %cst_14 = arith.constant dense<0.000000e+00> : vector<32x8xf32>
    %31 = tpu.matmul %29, %30, %cst_14 {dimension_numbers = #tpu.dot_dimension_numbers<[1], [0], [0], [1], [0, 0, 1, 1], [], []>} : vector<32x16xbf16>, vector<16x8xbf16>, vector<32x8xf32> -> vector<32x8xf32>
    %32 = arith.index_cast %c1_i32 : i32 to index
    %c0_15 = arith.constant 0 : index
    %c0_16 = arith.constant 0 : index
    %33 = vector.load %arg2[%32, %c0_15, %c0_16] : memref<3x32x1xf32, #tpu.memory_space<vmem>>, vector<1x32x1xf32>
    %34 = vector.shape_cast %33 : vector<1x32x1xf32> to vector<32x1xf32>
    %35 = vector.broadcast %34 : vector<32x1xf32> to vector<32x8xf32>
    %36 = arith.addf %31, %35 : vector<32x8xf32>
    %cst_17 = arith.constant 0.000000e+00 : f32
    %37 = vector.broadcast %cst_17 : f32 to vector<32x8xf32>
    %38 = arith.maximumf %36, %37 : vector<32x8xf32>
    %39 = arith.index_cast %c1_i32 : i32 to index
    %c0_18 = arith.constant 0 : index
    %c0_19 = arith.constant 0 : index
    %40 = vector.load %arg3[%39, %c0_18, %c0_19] : memref<3x16x32xbf16, #tpu.memory_space<vmem>>, vector<1x16x32xbf16>
    %41 = vector.shape_cast %40 : vector<1x16x32xbf16> to vector<16x32xbf16>
    %42 = arith.truncf %38 : vector<32x8xf32> to vector<32x8xbf16>
    %cst_20 = arith.constant dense<0.000000e+00> : vector<16x8xf32>
    %43 = tpu.matmul %41, %42, %cst_20 {dimension_numbers = #tpu.dot_dimension_numbers<[1], [0], [0], [1], [0, 0, 1, 1], [], []>} : vector<16x32xbf16>, vector<32x8xbf16>, vector<16x8xf32> -> vector<16x8xf32>
    %44 = arith.index_cast %c1_i32 : i32 to index
    %c0_21 = arith.constant 0 : index
    %c0_22 = arith.constant 0 : index
    %45 = vector.load %arg4[%44, %c0_21, %c0_22] : memref<3x16x1xf32, #tpu.memory_space<vmem>>, vector<1x16x1xf32>
    %46 = vector.shape_cast %45 : vector<1x16x1xf32> to vector<16x1xf32>
    %47 = vector.broadcast %46 : vector<16x1xf32> to vector<16x8xf32>
    %48 = arith.addf %43, %47 : vector<16x8xf32>
    %cst_23 = arith.constant 0.000000e+00 : f32
    %49 = vector.broadcast %cst_23 : f32 to vector<16x8xf32>
    %50 = arith.maximumf %48, %49 : vector<16x8xf32>
    %51 = arith.addf %26, %50 : vector<16x8xf32>
    %c2_i32 = arith.constant 2 : i32
    %52 = arith.index_cast %c2_i32 : i32 to index
    %c0_24 = arith.constant 0 : index
    %c0_25 = arith.constant 0 : index
    %53 = vector.load %arg1[%52, %c0_24, %c0_25] : memref<3x32x16xbf16, #tpu.memory_space<vmem>>, vector<1x32x16xbf16>
    %54 = vector.shape_cast %53 : vector<1x32x16xbf16> to vector<32x16xbf16>
    %55 = arith.truncf %51 : vector<16x8xf32> to vector<16x8xbf16>
    %cst_26 = arith.constant dense<0.000000e+00> : vector<32x8xf32>
    %56 = tpu.matmul %54, %55, %cst_26 {dimension_numbers = #tpu.dot_dimension_numbers<[1], [0], [0], [1], [0, 0, 1, 1], [], []>} : vector<32x16xbf16>, vector<16x8xbf16>, vector<32x8xf32> -> vector<32x8xf32>
    %57 = arith.index_cast %c2_i32 : i32 to index
    %c0_27 = arith.constant 0 : index
    %c0_28 = arith.constant 0 : index
    %58 = vector.load %arg2[%57, %c0_27, %c0_28] : memref<3x32x1xf32, #tpu.memory_space<vmem>>, vector<1x32x1xf32>
    %59 = vector.shape_cast %58 : vector<1x32x1xf32> to vector<32x1xf32>
    %60 = vector.broadcast %59 : vector<32x1xf32> to vector<32x8xf32>
    %61 = arith.addf %56, %60 : vector<32x8xf32>
    %cst_29 = arith.constant 0.000000e+00 : f32
    %62 = vector.broadcast %cst_29 : f32 to vector<32x8xf32>
    %63 = arith.maximumf %61, %62 : vector<32x8xf32>
    %64 = arith.index_cast %c2_i32 : i32 to index
    %c0_30 = arith.constant 0 : index
    %c0_31 = arith.constant 0 : index
    %65 = vector.load %arg3[%64, %c0_30, %c0_31] : memref<3x16x32xbf16, #tpu.memory_space<vmem>>, vector<1x16x32xbf16>
    %66 = vector.shape_cast %65 : vector<1x16x32xbf16> to vector<16x32xbf16>
    %67 = arith.truncf %63 : vector<32x8xf32> to vector<32x8xbf16>
    %cst_32 = arith.constant dense<0.000000e+00> : vector<16x8xf32>
    %68 = tpu.matmul %66, %67, %cst_32 {dimension_numbers = #tpu.dot_dimension_numbers<[1], [0], [0], [1], [0, 0, 1, 1], [], []>} : vector<16x32xbf16>, vector<32x8xbf16>, vector<16x8xf32> -> vector<16x8xf32>
    %69 = arith.index_cast %c2_i32 : i32 to index
    %c0_33 = arith.constant 0 : index
    %c0_34 = arith.constant 0 : index
    %70 = vector.load %arg4[%69, %c0_33, %c0_34] : memref<3x16x1xf32, #tpu.memory_space<vmem>>, vector<1x16x1xf32>
    %71 = vector.shape_cast %70 : vector<1x16x1xf32> to vector<16x1xf32>
    %72 = vector.broadcast %71 : vector<16x1xf32> to vector<16x8xf32>
    %73 = arith.addf %68, %72 : vector<16x8xf32>
    %cst_35 = arith.constant 0.000000e+00 : f32
    %74 = vector.broadcast %cst_35 : f32 to vector<16x8xf32>
    %75 = arith.maximumf %73, %74 : vector<16x8xf32>
    %76 = arith.addf %51, %75 : vector<16x8xf32>
    %c3_i32 = arith.constant 3 : i32
    %c0_36 = arith.constant 0 : index
    %c0_37 = arith.constant 0 : index
    %77 = vector.load %arg5[%c0_36, %c0_37] : memref<16x1xf32, #tpu.memory_space<vmem>>, vector<16x1xf32>
    %78 = vector.broadcast %77 : vector<16x1xf32> to vector<16x8xf32>
    %79 = arith.mulf %78, %76 : vector<16x8xf32>
    %cst_38 = arith.constant dense<0.000000e+00> : vector<8xf32>
    %80 = vector.multi_reduction <add>, %79, %cst_38 [0] : vector<16x8xf32> to vector<8xf32>
    %81 = vector.shape_cast %80 : vector<8xf32> to vector<1x8xf32>
    %c0_39 = arith.constant 0 : index
    %c0_40 = arith.constant 0 : index
    %82 = vector.load %arg6[%c0_39, %c0_40] : memref<1x1xf32, #tpu.memory_space<vmem>>, vector<1x1xf32>
    %83 = vector.broadcast %82 : vector<1x1xf32> to vector<1x8xf32>
    %84 = arith.addf %81, %83 : vector<1x8xf32>
    %c0_41 = arith.constant 0 : index
    %c0_42 = arith.constant 0 : index
    %85 = vector.load %arg8[%c0_41, %c0_42] : memref<1x8xf32, #tpu.memory_space<vmem>>, vector<1x8xf32>
    tpu.vector_store %arg8[%c0_41, %c0_42], %84 {strides = array<i32>} : memref<1x8xf32, #tpu.memory_space<vmem>>, vector<1x8xf32>,
    return
  }
  func.func @transform_0(%arg0: i32) -> (i32, i32, i32) {
    %c0_i32 = arith.constant 0 : i32
    %c0_i32_0 = arith.constant 0 : i32
    %c0_i32_1 = arith.constant 0 : i32
    %c0_i32_2 = arith.constant 0 : i32
    return %c0_i32, %c0_i32_0, %c0_i32_1 : i32, i32, i32
  }
  func.func @transform_1(%arg0: i32) -> (i32, i32, i32) {
    %c0_i32 = arith.constant 0 : i32
    %c0_i32_0 = arith.constant 0 : i32
    %c0_i32_1 = arith.constant 0 : i32
    %c0_i32_2 = arith.constant 0 : i32
    return %c0_i32, %c0_i32_0, %c0_i32_1 : i32, i32, i32
  }
  func.func @transform_2(%arg0: i32) -> (i32, i32, i32) {
    %c0_i32 = arith.constant 0 : i32
    %c0_i32_0 = arith.constant 0 : i32
    %c0_i32_1 = arith.constant 0 : i32
    %c0_i32_2 = arith.constant 0 : i32
    return %c0_i32, %c0_i32_0, %c0_i32_1 : i32, i32, i32
  }
  func.func @transform_3(%arg0: i32) -> (i32, i32, i32) {
    %c0_i32 = arith.constant 0 : i32
    %c0_i32_0 = arith.constant 0 : i32
    %c0_i32_1 = arith.constant 0 : i32
    %c0_i32_2 = arith.constant 0 : i32
    return %c0_i32, %c0_i32_0, %c0_i32_1 : i32, i32, i32
  }
  func.func @transform_4(%arg0: i32) -> (i32, i32) {
    %c0_i32 = arith.constant 0 : i32
    %c0_i32_0 = arith.constant 0 : i32
    %c0_i32_1 = arith.constant 0 : i32
    return %c0_i32, %c0_i32_0 : i32, i32
  }
  func.func @transform_5(%arg0: i32) -> (i32, i32) {
    %c0_i32 = arith.constant 0 : i32
    %c0_i32_0 = arith.constant 0 : i32
    %c0_i32_1 = arith.constant 0 : i32
    return %c0_i32, %c0_i32_0 : i32, i32
  }
  func.func @transform_6(%arg0: i32) -> (i32, i32) {
    %c0_i32 = arith.constant 0 : i32
    %c0_i32_0 = arith.constant 0 : i32
    return %arg0, %c0_i32 : i32, i32
  }
  func.func @transform_7(%arg0: i32) -> (i32, i32) {
    %c0_i32 = arith.constant 0 : i32
    %c0_i32_0 = arith.constant 0 : i32
    return %c0_i32, %arg0 : i32, i32
  }
}

</mosaic_0001>

<bundles_post_ra>
// kernel: tpu_custom_call.1
= control target key start
LH: loop header
LB: loop body
LE: loop exit
PB: predicated region body
PF: predicated region fallthrough
CT: control target
= control target key end

     0   :  { %s936_s0 = inlined_call_operand.vmem [shape: bf16[3,32,16], index: 0, kind: input, shape index: {}]   ;;  %s937_s1 = inlined_call_operand.vmem [shape: f32[3,32,1], index: 1, kind: input, shape index: {}]   ;;  %s938_s2 = inlined_call_operand.vmem [shape: bf16[3,16,32], index: 2, kind: input, shape index: {}]   ;;  %s939_s3 = inlined_call_operand.vmem [shape: f32[3,16,1], index: 3, kind: input, shape index: {}]   ;;  %s940_s4 = inlined_call_operand.vmem [shape: f32[16,1], index: 4, kind: input, shape index: {}]   ;;  %s941_s5 = inlined_call_operand.<no memory space> [shape: f32[1,1], index: 5, kind: input, shape index: {}]   ;;  %s942_s6 = inlined_call_operand.vmem [shape: f32[8,16], index: 6, kind: input, shape index: {}]   ;;  %s943_s7 = inlined_call_operand.hbm [shape: f32[1,8], index: 7, kind: output, shape index: {}]  }
   0x1   :  { %v12_v0 = vstv %s941_s5 }
   0x2   :  { %13 = vst [vmem:[#allocation2] sm:$0x1] %v12_v0 }
   0x3   :  { %v30_v1 = vld [vmem:[%s942_s6] sm:$0xff] }
   0x4   :  { %31 = vxpose.xlu0.b32.start.end [1/1] (short) (narrow) %v30_v1, 16 }
   0x5   :  { %14 = vsyncpa [#allocation4], 0  ;;  %v733_v2 = vld [vmem:[%s936_s0] sm:$0xff]   ;;  %vm102_vm0 = vcmask 130048   ;;  %v69_v3 = vld [vmem:[%s937_s1 + $0x8] sm:$0xff]  ;;  %v766_v4 = vmov 0  }
   0x6   :  { %687 = vmatprep.mubr.msk.bf16.mxu0 %vm102_vm0, %v733_v2  ;;  %732 = vset.pattern.permute.xlu1 %v766_v4  ;;  %v70_v5 = vld [vmem:[%s937_s1 + $0x10] sm:$0xff]  ;;  %v71_v6 = vld [vmem:[%s937_s1 + $0x18] sm:$0xff]  ;;  %v166_v7 = vld [vmem:[%s939_s3] sm:$0xff]  ;;  %v767_v29 = vmov 0.0   ;;  %vm768_vm1 = vmmov 0   ;;  %vm183_vm2 = vcmask 261120  }
   0x7   :  { %79 = vperm.xlu1 %732, %v69_v3   ;;  %v167_v8 = vld [vmem:[%s939_s3 + $0x8] sm:$0xff]  ;;  %v635_v9 = vld [vmem:[%s937_s1 + $0x20] sm:$0xff]  ;;  %v637_v11 = vld [vmem:[%s937_s1 + $0x30] sm:$0xff]  ;;  %691 = vmatprep.subr.bf16.mxu1 %v767_v29  ;;  %vm588_vm3 = vcmask 64512   ;;  %vm609_vm4 = vcmask 57344  }
   0x8   :  { %v636_v10 = vld [vmem:[%s937_s1 + $0x28] sm:$0xff]  ;;  %v638_v12 = vld [vmem:[%s937_s1 + $0x38] sm:$0xff]  ;;  %v68_v13 = vld [vmem:[%s937_s1] sm:$0xff]  ;;  %695 = vmatprep.mubr.msk.bf16.mxu1 %vm768_vm1, %v767_v29 }
   0x9   :  { %v645_v14 = vld [vmem:[%s939_s3 + $0x10] sm:$0xff]  ;;  %v646_v16 = vld [vmem:[%s939_s3 + $0x18] sm:$0xff]  ;;  %v663_v17 = vld [vmem:[%s939_s3 + $0x20] sm:$0xff] }
   0xa   :  { %v655_v15 = vld [vmem:[%s937_s1 + $0x50] sm:$0xff]  ;;  %v653_v18 = vld [vmem:[%s937_s1 + $0x40] sm:$0xff]  ;;  %v654_v20 = vld [vmem:[%s937_s1 + $0x48] sm:$0xff] }
   0xb   :  { %84 = vperm.xlu1 %732, %v70_v5   ;;  %v574_v19 = vld [vmem:[%s940_s4] sm:$0xff]  ;;  %v656_v22 = vld [vmem:[%s937_s1 + $0x58] sm:$0xff]  ;;  %v664_v23 = vld [vmem:[%s939_s3 + $0x28] sm:$0xff] }
   0xc   :  { %v598_v21 = vld [vmem:[#allocation2] sm:$0x1]  ;;  %v575_v24 = vld [vmem:[%s940_s4 + $0x8] sm:$0xff]  ;;  %v736_v49 = vld [vmem:[%s936_s0 + $0x10] sm:$0xff]  }
   0xd   :  { %v734_v28 = vld [vmem:[%s936_s0 + $0x8] sm:$0xff]   ;;  %v735_v48 = vld [vmem:[%s938_s2] sm:$0xff]   ;;  %v737_v63 = vld [vmem:[%s936_s0 + $0x18] sm:$0xff]  }
   0xf   :  { %89 = vperm.xlu1 %732, %v71_v6  }
  0x13   :  { %170 = vperm.xlu1 %732, %v166_v7  }
  0x17   :  { %175 = vperm.xlu1 %732, %v167_v8  }
  0x1b   :  { %245 = vperm.xlu1 %732, %v635_v9  }
  0x1f   :  { %250 = vperm.xlu1 %732, %v636_v10  }
  0x23   :  { %255 = vperm.xlu1 %732, %v637_v11  }
  0x27   :  { %260 = vperm.xlu1 %732, %v638_v12  }
  0x2b   :  { %342 = vperm.xlu1 %732, %v645_v14  }
  0x2d   :  { %731 = vset.pattern.permute.xlu0 %v766_v4 }
  0x2f   :  { %347 = vperm.xlu1 %732, %v646_v16  }
  0x31   :  { %74 = vperm.xlu0 %731, %v68_v13  }
  0x33   :  { %416 = vperm.xlu1 %732, %v653_v18   ;;  %v738_v18 = vld [vmem:[%s938_s2 + $0x8] sm:$0xff]  }
  0x35   :  { %426 = vperm.xlu0 %731, %v655_v15  }
  0x37   :  { %421 = vperm.xlu1 %732, %v654_v20  }
  0x39   :  { %513 = vperm.xlu0 %731, %v663_v17  }
  0x3b   :  { %431 = vperm.xlu1 %732, %v656_v22  }
  0x3d   :  { %578 = vperm.xlu0 %731, %v574_v19   ;;  %v739_v19 = vld [vmem:[%s936_s0 + $0x20] sm:$0xff]  }
  0x3f   :  { %518 = vperm.xlu1 %732, %v664_v23  }
  0x41   :  { %601 = vperm.xlu0 %731, %v598_v21  }
  0x43   :  { %583 = vperm.xlu1 %732, %v575_v24  }
  0x84   :  { %v47_v25 = vpop.trf.xlu0 }
  0x86   :  { %v80_v30 = vpop.permute.xlu1 %79 }
  0x88   :  { %v48_v26 = vpop.trf.xlu0 }
  0x89   :  { %v67_v27 = vpack.c.bf16 %v48_v26, %v47_v25 }
  0x8a   :  { %v85_v31 = vpop.permute.xlu1 %84 }
  0x8b   :  { %685 = vmatprep.subr.bf16.mxu0 %v67_v27 }
  0x8c   :  { %686 = vmatpush3.bf16.msra.mxu0 %v67_v27 }
  0x8e   :  { %v90_v36 = vpop.permute.xlu1 %89 }
  0x8f   :  { %688 = vmatmul.mubr.msk.bf16.vlgmr.msra.gmra.mrb[0].mxu0 %vm102_vm0, %v734_v28 }
  0x90   :  { %701 = vmatprep.mubr.msk.bf16.mxu0 %vm102_vm0, %v736_v49 }
  0x92   :  { %v171_v50 = vpop.permute.xlu1 %170 }
  0x96   :  { %v176_v54 = vpop.permute.xlu1 %175 }
  0x9a   :  { %v246_v0 = vpop.permute.xlu1 %245 }
  0x9e   :  { %v251_v1 = vpop.permute.xlu1 %250 }
  0xa2   :  { %v256_v2 = vpop.permute.xlu1 %255 }
  0xa6   :  { %v261_v6 = vpop.permute.xlu1 %260 }
  0xaa   :  { %v343_v20 = vpop.permute.xlu1 %342 }
  0xae   :  { %v348_v24 = vpop.permute.xlu1 %347 }
  0xb0   :  { %v75_v33 = vpop.permute.xlu0 %74 }
 0x162   :  { %v689_v32 = vpop.f32.mrb[0].mxu0 }
 0x163   :  { %v152_v34 = vadd.f32 %v689_v32, %v85_v31  ;;  %v143_v35 = vpop.f32.mrb[1].mxu0 }
 0x164   :  { %v144_v37 = vadd.f32 %v143_v35, %v75_v33  ;;  %v690_v38 = vpop.f32.mrb[2].mxu0  ;;  %v417_v35 = vpop.permute.xlu1 %416 }
 0x165   :  { %v155_v39 = vadd.f32 %v690_v38, %v90_v36  ;;  %v146_v40 = vpop.f32.mrb[3].mxu0  ;;  %v160_v42 = vmax.f32 %v152_v34, 0.0  ;;  %v740_v34 = vld [vmem:[%s936_s0 + $0x28] sm:$0xff]  }
 0x166   :  { %v147_v41 = vadd.f32 %v146_v40, %v80_v30  ;;  %v158_v44 = vmax.f32 %v144_v37, 0.0  ;;  %v427_v37 = vpop.permute.xlu0 %426 }
 0x167   :  { %v161_v43 = vmax.f32 %v155_v39, 0.0 }
 0x168   :  { %v159_v45 = vmax.f32 %v147_v41, 0.0  ;;  %v422_v36 = vpop.permute.xlu1 %421 }
 0x169   :  { %v165_v46 = vpack.c.bf16 %v161_v43, %v160_v42 }
 0x16a   :  { %v164_v47 = vpack.c.bf16 %v159_v45, %v158_v44 }
 0x16c   :  { %692 = vmatpush3.bf16.msra.mxu1 %v164_v47  ;;  %v432_v41 = vpop.permute.xlu1 %431 }
 0x16d   :  { %693 = vmatprep.subr.bf16.mxu1 %v767_v29 }
 0x170   :  { %694 = vmatpush3.bf16.msra.mxu1 %v165_v46 }
 0x171   :  { %705 = vmatprep.subr.bf16.mxu1 %v767_v29 }
 0x173   :  { %696 = vmatmul.mubr.msk.bf16.vlgmr.msra.gmra.mrb[0].mxu1 %vm183_vm2, %v735_v48 }
 0x174   :  { %709 = vmatprep.mubr.msk.bf16.mxu1 %vm768_vm1, %v767_v29 }
 0x246   :  { %v221_v51 = vpop.f32.mrb[0].mxu1 }
 0x247   :  { %v222_v52 = vadd.f32 %v221_v51, %v171_v50  ;;  %v697_v53 = vpop.f32.mrb[1].mxu1 }
 0x248   :  { %v224_v55 = vpop.f32.mrb[2].mxu1  ;;  %v741_v53 = vld [vmem:[%s938_s2 + $0x10] sm:$0xff]   ;;  %s769_s2 = smov [#allocation3]  }
 0x249   :  { %v228_v56 = vmax.f32 %v222_v52, 0.0  ;;  %v225_v57 = vadd.f32 %v224_v55, %v176_v54  ;;  %v698_v58 = vpop.f32.mrb[3].mxu1  ;;  %v514_v54 = vpop.permute.xlu0 %513  ;;  %s617_s5 = sshll.u32 %s769_s2, 4  ;;  %s618_s5 = int_to_ptr.vmem [resolvable:$true] %s617_s5 }
 0x24a   :  { %v519_v58 = vpop.permute.xlu1 %518  ;;  %s742_s9 = scalar_lea.vmem %s618_s5, 16  ;;  %s746_s6 = scalar_lea.vmem %s618_s5, 32 }
 0x24b   :  { %v229_v59 = vmax.f32 %v225_v57, 0.0  ;;  %v230_v60 = vadd.f32 %v228_v56, %v47_v25  ;;  %p743_p0 = scmp.ne.s32.totalorder %s618_s5, %s742_s9  ;;  %p747_p1 = scmp.lt.s32.totalorder %s618_s5, %s618_s5 }
 0x24c   :  { %p748_p2 = scmp.lt.s32.totalorder %s746_s6, %s742_s9 }
 0x24d   :  { %v231_v61 = vadd.f32 %v229_v59, %v48_v26 }
 0x24e   :  { %p749_p3 = por %p748_p2, %p747_p1 }
 0x24f   :  { %v237_v62 = vpack.c.bf16 %v231_v61, %v230_v60 }
 0x250   :  { %p750_p4 = pnand %p749_p3, %p743_p0 }
 0x251   :  { %699 = vmatprep.subr.bf16.mxu0 %v237_v62 }
 0x252   :  { %700 = vmatpush3.bf16.msra.mxu0 %v237_v62 }
 0x255   :  { %702 = vmatmul.mubr.msk.bf16.vlgmr.msra.gmra.mrb[4].mxu0 %vm102_vm0, %v737_v63 }
 0x256   :  { %715 = vmatprep.mubr.msk.bf16.mxu0 %vm102_vm0, %v739_v19 }
 0x328   :  { %v703_v3 = vpop.f32.mrb[4].mxu0 }
 0x329   :  { %v322_v4 = vadd.f32 %v703_v3, %v256_v2  ;;  %v313_v5 = vpop.f32.mrb[5].mxu0  ;;  %v584_v3 = vpop.permute.xlu1 %583 }
 0x32a   :  { %v314_v7 = vadd.f32 %v313_v5, %v246_v0  ;;  %v704_v8 = vpop.f32.mrb[6].mxu0 }
 0x32b   :  { %v325_v9 = vadd.f32 %v704_v8, %v261_v6  ;;  %v316_v10 = vpop.f32.mrb[7].mxu0  ;;  %v330_v12 = vmax.f32 %v322_v4, 0.0 }
 0x32c   :  { %v317_v11 = vadd.f32 %v316_v10, %v251_v1  ;;  %v328_v14 = vmax.f32 %v314_v7, 0.0  ;;  %v579_v1 = vpop.permute.xlu0 %578  ;;  %v604_v7 = vlaneseq }
 0x32d   :  { %v331_v13 = vmax.f32 %v325_v9, 0.0 }
 0x32e   :  { %v329_v15 = vmax.f32 %v317_v11, 0.0  ;;  %v605_v10 = vshrl.u32 %v604_v7, 7 }
 0x32f   :  { %v336_v16 = vpack.c.bf16 %v331_v13, %v330_v12 }
 0x330   :  { %v335_v17 = vpack.c.bf16 %v329_v15, %v328_v14  ;;  %v606_v13 = vsub.s32 0, %v605_v10  ;;  %v602_v15 = vpop.permute.xlu0 %601 }
 0x332   :  { %706 = vmatpush3.bf16.msra.mxu1 %v335_v17  ;;  %v607_v17 = vrot.slane %v602_v15, %v606_v13 }
 0x333   :  { %707 = vmatprep.subr.bf16.mxu1 %v767_v29 }
 0x336   :  { %708 = vmatpush3.bf16.msra.mxu1 %v336_v16 }
 0x337   :  { %719 = vmatprep.subr.bf16.mxu1 %v767_v29 }
 0x339   :  { %710 = vmatmul.mubr.msk.bf16.vlgmr.msra.gmra.mrb[4].mxu1 %vm183_vm2, %v738_v18 }
 0x33a   :  { %723 = vmatprep.mubr.msk.bf16.mxu1 %vm768_vm1, %v767_v29 }
 0x40c   :  { %v392_v21 = vpop.f32.mrb[4].mxu1 }
 0x40d   :  { %v393_v22 = vadd.f32 %v392_v21, %v343_v20  ;;  %v711_v23 = vpop.f32.mrb[5].mxu1 }
 0x40e   :  { %v395_v25 = vpop.f32.mrb[6].mxu1 }
 0x40f   :  { %v399_v26 = vmax.f32 %v393_v22, 0.0  ;;  %v396_v27 = vadd.f32 %v395_v25, %v348_v24  ;;  %v712_v28 = vpop.f32.mrb[7].mxu1 }
 0x411   :  { %v400_v30 = vmax.f32 %v396_v27, 0.0  ;;  %v401_v31 = vadd.f32 %v399_v26, %v230_v60 }
 0x413   :  { %v402_v32 = vadd.f32 %v400_v30, %v231_v61 }
 0x415   :  { %v408_v33 = vpack.c.bf16 %v402_v32, %v401_v31 }
 0x417   :  { %713 = vmatprep.subr.bf16.mxu0 %v408_v33 }
 0x418   :  { %714 = vmatpush3.bf16.msra.mxu0 %v408_v33 }
 0x41b   :  { %716 = vmatmul.mubr.msk.bf16.vlgmr.msra.gmra.mrb[8].mxu0 %vm102_vm0, %v740_v34 }
 0x4ee   :  { %v717_v38 = vpop.f32.mrb[8].mxu0 }
 0x4ef   :  { %v493_v39 = vadd.f32 %v717_v38, %v427_v37  ;;  %v484_v40 = vpop.f32.mrb[9].mxu0 }
 0x4f0   :  { %v485_v42 = vadd.f32 %v484_v40, %v417_v35  ;;  %v718_v43 = vpop.f32.mrb[10].mxu0 }
 0x4f1   :  { %v496_v44 = vadd.f32 %v718_v43, %v432_v41  ;;  %v487_v45 = vpop.f32.mrb[11].mxu0  ;;  %v501_v47 = vmax.f32 %v493_v39, 0.0 }
 0x4f2   :  { %v488_v46 = vadd.f32 %v487_v45, %v422_v36  ;;  %v499_v49 = vmax.f32 %v485_v42, 0.0 }
 0x4f3   :  { %v502_v48 = vmax.f32 %v496_v44, 0.0 }
 0x4f4   :  { %v500_v50 = vmax.f32 %v488_v46, 0.0 }
 0x4f5   :  { %v507_v51 = vpack.c.bf16 %v502_v48, %v501_v47 }
 0x4f6   :  { %v506_v52 = vpack.c.bf16 %v500_v50, %v499_v49 }
 0x4f8   :  { %720 = vmatpush3.bf16.msra.mxu1 %v506_v52 }
 0x4f9   :  { %721 = vmatprep.subr.bf16.mxu1 %v767_v29 }
 0x4fc   :  { %722 = vmatpush3.bf16.msra.mxu1 %v507_v51 }
 0x4ff   :  { %724 = vmatmul.mubr.msk.bf16.vlgmr.msra.gmra.mrb[8].mxu1 %vm183_vm2, %v741_v53 }
 0x5d2   :  { %v563_v55 = vpop.f32.mrb[8].mxu1 }
 0x5d3   :  { %v564_v56 = vadd.f32 %v563_v55, %v514_v54  ;;  %v725_v57 = vpop.f32.mrb[9].mxu1 }
 0x5d4   :  { %v566_v59 = vpop.f32.mrb[10].mxu1 }
 0x5d5   :  { %v570_v60 = vmax.f32 %v564_v56, 0.0  ;;  %v567_v61 = vadd.f32 %v566_v59, %v519_v58  ;;  %v726_v62 = vpop.f32.mrb[11].mxu1 }
 0x5d7   :  { %v572_v63 = vadd.f32 %v570_v60, %v401_v31  ;;  %v571_v0 = vmax.f32 %v567_v61, 0.0 }
 0x5d9   :  { %v586_v29 = vmul.f32 %v579_v1, %v572_v63  ;;  %v573_v2 = vadd.f32 %v571_v0, %v402_v32 }
 0x5db   :  { %v587_v4 = vmul.f32 %v584_v3, %v573_v2  ;;  %v589_v5 = vsel %vm588_vm3, %v586_v29, 0.0 }
 0x5dd   :  { %v590_v6 = vsel %vm588_vm3, %v587_v4, 0.0 }
 0x5de   :  { %v591_v8 = vadd.f32 %v590_v6, %v589_v5 }
 0x5e0   :  { %v592_v9 = vrot.slane %v591_v8, 4 }
 0x5e2   :  { %v593_v11 = vadd.f32 %v592_v9, %v591_v8 }
 0x5e4   :  { %v594_v12 = vrot.slane %v593_v11, 2 }
 0x5e6   :  { %v595_v14 = vadd.f32 %v594_v12, %v593_v11 }
 0x5e8   :  { %v596_v16 = vrot.slane %v595_v14, 1 }
 0x5ea   :  { %v597_v18 = vadd.f32 %v596_v16, %v595_v14 }
 0x5ec   :  { %v608_v19 = vadd.f32 %v607_v17, %v597_v18 }
 0x5ee   :  { %610 = vst.msk [vmem:[#allocation3] sm:$0x1] %vm609_vm4, %v608_v19 }
 0x5ef   :  { %753 = shalt.err (!%p750_p4)
}
 0x5f0   :  { %s754_s12 = scalar_lea.hbm %s943_s7, 16 }
 0x5f1   :  { %p755_p5 = scmp.ne.s32.totalorder %s943_s7, %s754_s12  ;;  %p758_p6 = scmp.lt.u32.totalorder %s754_s12, %s943_s7 }
 0x5f3   :  { %p760_p7 = pnand %p758_p6, %p755_p5 }
 0x5f5   :  { %763 = shalt.err (!%p760_p7)
}
 0x5f6   :  { %620 = dma.vmem_to_hbm [thread:$0]  %s618_s5, 16, %s943_s7, [#allocation4]  }
 0x5f7   :  { %764 = dma.done.wait [#allocation4], 16  }
 0x5f8   :  { %765 = vsyncadd [#allocation4], 4294967280 }
 0x5f9   :  { %624 = vsyncpa [#allocation4], 1 }

</bundles_post_ra>
